<compile_context>
chip_gen: v7x
topology: tpu7x:2x2x1
jax: 0.10.0
libtpu: 0.0.40
codegen_flags: <defaults>
</compile_context>

<pallas_src>
import functools

import jax
import jax.numpy as jnp
from jax.experimental import pallas as pl
from jax.experimental.pallas import tpu as pltpu

_LANES = 128
_SUBLANES = 8


def _round_up(x: int, m: int) -> int:
    return ((x + m - 1) // m) * m


def _efficiency_loss_kernel(params_ref, x_ref, out_ref, *,
                            rows_total: int, block_rows: int,
                            steps_per_core: int, acc_rows: int,
                            needs_mask: bool):
    """Accumulate sum(where(p < threshold, p, 0)) for one row tile.

    params_ref: SMEM (1,) f32          -> [threshold]
    x_ref:      VMEM (block_rows, C)   -> tile of (possibly lane-packed) probs
    out_ref:    VMEM (acc_rows, C) f32 -> partial-sum block, resident across
                the inner ("arbitrary") grid axis; one block per core split.
    """
    i = pl.program_id(1)

    @pl.when(i == 0)
    def _init():
        out_ref[...] = jnp.zeros_like(out_ref)

    thr = params_ref[0]
    x = x_ref[...]
    # Threshold select in the input's native dtype (keeps bf16 on the bf16 VPU
    # path on v6e/v7x); widen to f32 only for the accumulate.
    small = jnp.where(x < thr.astype(x.dtype), x, jnp.zeros((), x.dtype))
    small = small.astype(jnp.float32)

    def _accumulate(vals):
        if acc_rows == block_rows:
            out_ref[...] += vals
        else:
            # (tr, C) -> (tr//8, 8, C): tile-aligned split of the sublane dim,
            # reduced with plain vreg adds (no XLU work per step).
            out_ref[...] += jnp.sum(
                vals.reshape(-1, acc_rows, vals.shape[-1]), axis=0)

    if needs_mask:
        # Only the globally-last tile is partial; keep the mask off the
        # steady-state path.
        row0 = (pl.program_id(0) * steps_per_core + i) * block_rows

        @pl.when(row0 + block_rows > rows_total)
        def _partial_tile():
            rows = row0 + jax.lax.broadcasted_iota(jnp.int32, small.shape, 0)
            _accumulate(jnp.where(rows < rows_total, small, jnp.float32(0.0)))

        @pl.when(row0 + block_rows <= rows_total)
        def _full_tile():
            _accumulate(small)
    else:
        _accumulate(small)


def efficiency_loss(routing_probs: jax.Array,
                    threshold: float = 0.1,
                    weight: float = 1.0,
                    target_block_bytes: int = 4 * 1024 * 1024,
                    num_core_splits: int = 2) -> jax.Array:
    """Pallas TPU implementation of EfficiencyLoss.forward."""
    B, E = routing_probs.shape
    total = B * E

    # Runtime scalar in SMEM: changing the threshold never recompiles Mosaic.
    params = jnp.asarray([threshold], dtype=jnp.float32)

    # Lane-dense view whenever possible: the loss is a full-element reduction,
    # so (B, E) -> (B*E/128, 128) fills every vreg lane.
    if total % _LANES == 0:
        x = routing_probs.reshape(total // _LANES, _LANES)
    else:
        x = routing_probs
    R, C = x.shape
    itemsize = x.dtype.itemsize

    # Row tile from a per-step byte target (~4 MiB default: per-step DMA time
    # dwarfs the ~0.35 us fixed grid-step overhead on v5e/v6e/v7x).
    if R < _SUBLANES:
        tr = R                             # single full-array block
    else:
        target_rows = max(_SUBLANES,
                          (target_block_bytes // (C * itemsize))
                          // _SUBLANES * _SUBLANES)
        tr = min(target_rows, (R // _SUBLANES) * _SUBLANES)
    n_tiles = pl.cdiv(R, tr)

    # Split the row range across TensorCores (2 TCs on v7x; a harmless
    # sequential second pass on single-TC v5e/v6e).
    num_splits, steps = 1, n_tiles
    if num_core_splits > 1 and n_tiles >= 2:
        if n_tiles % num_core_splits == 0:
            num_splits, steps = num_core_splits, n_tiles // num_core_splits
        else:
            # Retile so the tile count divides evenly across cores while the
            # last tile still starts in-bounds (never issue a fully-OOB DMA).
            steps2 = pl.cdiv(n_tiles, num_core_splits)
            tr2 = _round_up(pl.cdiv(R, num_core_splits * steps2), _SUBLANES)
            tr2 = min(tr2, (R // _SUBLANES) * _SUBLANES)
            if pl.cdiv(R, tr2) == num_core_splits * steps2:
                tr, num_splits, steps = tr2, num_core_splits, steps2

    needs_mask = (R % tr) != 0
    acc_rows = _SUBLANES if tr % _SUBLANES == 0 else tr

    kernel = functools.partial(
        _efficiency_loss_kernel,
        rows_total=R, block_rows=tr, steps_per_core=steps,
        acc_rows=acc_rows, needs_mask=needs_mask)

    partials = pl.pallas_call(
        kernel,
        out_shape=jax.ShapeDtypeStruct((num_splits * acc_rows, C),
                                       jnp.float32),
        grid_spec=pltpu.PrefetchScalarGridSpec(
            num_scalar_prefetch=0,
            grid=(num_splits, steps),
            in_specs=[
                pl.BlockSpec(memory_space=pltpu.SMEM),           # params (1,)
                pl.BlockSpec((tr, C),
                             lambda c, i: (c * steps + i, 0)),   # prob tile
            ],
            out_specs=pl.BlockSpec((acc_rows, C), lambda c, i: (c, 0)),
        ),
        compiler_params=pltpu.CompilerParams(
            dimension_semantics=("parallel", "arbitrary"),
            vmem_limit_bytes=32 * 1024 * 1024,
        ),
        cost_estimate=pl.CostEstimate(
            flops=2 * total,
            transcendentals=0,
            bytes_accessed=total * itemsize
            + num_splits * acc_rows * C * 4 + 4,
        ),
    )(params, x)

    # Tiny epilogue: one cross-lane reduce of <= num_splits*(8,128) partials
    # plus the weight/B scale (negligible vs. the HBM stream).
    return jnp.sum(partials) * (jnp.asarray(weight, jnp.float32)
                                / jnp.float32(B))


def _reference(routing_probs, threshold=0.1, weight=1.0):
    p = routing_probs
    small = jnp.where(p < jnp.asarray(threshold, p.dtype), p,
                      jnp.zeros_like(p))
    return (jnp.float32(weight)
            * small.astype(jnp.float32).sum(axis=-1).mean())


if __name__ == "__main__":
    key = jax.random.PRNGKey(0)

    def make_probs(k, b, e, dtype=jnp.float32):
        logits = jax.random.normal(k, (b, e), dtype=jnp.float32)
        return jax.nn.softmax(logits, axis=-1).astype(dtype)

    def check(name, got, want, tol=1e-5):
        got = jax.block_until_ready(got)
        assert jnp.allclose(got, want, atol=tol, rtol=tol), (
            f"{name}: got {got}, want {want}")

    keys = jax.random.split(key, 6)

    # 1) Module-default small shape [8, 32] (repacks to (2, 128), tiny-R path).
    p0 = make_probs(keys[0], 8, 32)
    check("case1", efficiency_loss(p0, threshold=0.1, weight=1.0),
          _reference(p0, 0.1, 1.0))

    # 2) Different threshold / weight: runtime scalars, same Mosaic kernel.
    check("case2", efficiency_loss(p0, threshold=0.05, weight=0.5),
          _reference(p0, 0.05, 0.5))

    # 3) (32, 32) -> lane-dense (8, 128), single (8, 128)-accumulator tile.
    p1 = make_probs(keys[1], 32, 32)
    check("case3", efficiency_loss(p1, 0.1, 1.0), _reference(p1, 0.1, 1.0))

    # 4) (20, 32) -> lane-dense (5, 128) (relaxed repack condition).
    p2 = make_probs(keys[2], 20, 32)
    check("case4", efficiency_loss(p2, 0.1, 2.0), _reference(p2, 0.1, 2.0))

    # 5) bf16 input, two-core split, tr=16 tile folded into the (8,128) acc.
    p3 = make_probs(keys[3], 128, 32, dtype=jnp.bfloat16)
    check("case5", efficiency_loss(p3, 0.1, 1.0, target_block_bytes=4096),
          _reference(p3, 0.1, 1.0), tol=1e-4)

    # 6) Two-core split + partial last tile mask ((25, 128) view, tr=8).
    p4 = make_probs(keys[4], 100, 32)
    check("case6", efficiency_loss(p4, 0.1, 1.5, target_block_bytes=4096),
          _reference(p4, 0.1, 1.5))

    # 7) Non-repackable fallback layout (6, 20).
    p5 = make_probs(keys[5], 6, 20)
    check("case7", efficiency_loss(p5, 0.1, 1.0), _reference(p5, 0.1, 1.0))

    print("KERNEL_OK")
</pallas_src>

<mosaic_0001>
module attributes {stable_mosaic.version = 11 : i64} {
  func.func @_efficiency_loss_kernel(%arg0: i32, %arg1: i32, %arg2: memref<1xf32, #tpu.memory_space<smem>>, %arg3: memref<2x128xf32, #tpu.memory_space<vmem>>, %arg4: memref<2x128xf32, #tpu.memory_space<vmem>>) attributes {dimension_semantics = [#tpu.dimension_semantics<parallel>, #tpu.dimension_semantics<arbitrary>], iteration_bounds = array<i64: 1, 1>, scalar_prefetch = 0 : i64, scratch_operands = 0 : i64, tpu.core_type = #tpu.core_type<tc>, window_params = [{transform_indices = @transform_0, window_bounds = array<i64: 1>}, {transform_indices = @transform_1, window_bounds = array<i64: 2, 128>}, {transform_indices = @transform_2, window_bounds = array<i64: 2, 128>}]} {
    %c0_i32 = arith.constant 0 : i32
    %0 = arith.cmpi eq, %arg1, %c0_i32 : i32
    %1 = arith.extui %0 : i1 to i32
    %c0_i32_0 = arith.constant 0 : i32
    %2 = arith.cmpi ne, %1, %c0_i32_0 : i32
    scf.if %2 {
      %cst_7 = arith.constant 0.000000e+00 : f32
      %12 = vector.broadcast %cst_7 : f32 to vector<2x128xf32>
      %c0_8 = arith.constant 0 : index
      %c0_9 = arith.constant 0 : index
      %13 = vector.load %arg4[%c0_8, %c0_9] : memref<2x128xf32, #tpu.memory_space<vmem>>, vector<2x128xf32>
      tpu.vector_store %arg4[%c0_8, %c0_9], %12 {strides = array<i32>} : memref<2x128xf32, #tpu.memory_space<vmem>>, vector<2x128xf32>,
    } else {
    }
    %c0 = arith.constant 0 : index
    %3 = memref.load %arg2[%c0] : memref<1xf32, #tpu.memory_space<smem>>
    %c0_1 = arith.constant 0 : index
    %c0_2 = arith.constant 0 : index
    %4 = vector.load %arg3[%c0_1, %c0_2] : memref<2x128xf32, #tpu.memory_space<vmem>>, vector<2x128xf32>
    %5 = vector.broadcast %3 : f32 to vector<2x128xf32>
    %6 = arith.cmpf olt, %4, %5 : vector<2x128xf32>
    %cst = arith.constant 0.000000e+00 : f32
    %7 = vector.broadcast %cst : f32 to vector<2x128xf32>
    %8 = arith.select %6, %4, %7 : vector<2x128xi1>, vector<2x128xf32>
    %c0_3 = arith.constant 0 : index
    %c0_4 = arith.constant 0 : index
    %9 = vector.load %arg4[%c0_3, %c0_4] : memref<2x128xf32, #tpu.memory_space<vmem>>, vector<2x128xf32>
    %10 = arith.addf %9, %8 : vector<2x128xf32>
    %c0_5 = arith.constant 0 : index
    %c0_6 = arith.constant 0 : index
    %11 = vector.load %arg4[%c0_5, %c0_6] : memref<2x128xf32, #tpu.memory_space<vmem>>, vector<2x128xf32>
    tpu.vector_store %arg4[%c0_5, %c0_6], %10 {strides = array<i32>} : memref<2x128xf32, #tpu.memory_space<vmem>>, vector<2x128xf32>,
    return
  }
  func.func @transform_0(%arg0: i32, %arg1: i32) -> i32 {
    %c0_i32 = arith.constant 0 : i32
    %c0_i32_0 = arith.constant 0 : i32
    return %c0_i32 : i32
  }
  func.func @transform_1(%arg0: i32, %arg1: i32) -> (i32, i32) {
    %c1_i32 = arith.constant 1 : i32
    %0 = arith.muli %arg0, %c1_i32 : i32
    %1 = arith.addi %0, %arg1 : i32
    %c0_i32 = arith.constant 0 : i32
    %c0_i32_0 = arith.constant 0 : i32
    return %1, %c0_i32 : i32, i32
  }
  func.func @transform_2(%arg0: i32, %arg1: i32) -> (i32, i32) {
    %c0_i32 = arith.constant 0 : i32
    %c0_i32_0 = arith.constant 0 : i32
    return %arg0, %c0_i32 : i32, i32
  }
}

</mosaic_0001>

<bundles_post_ra>
// kernel: tpu_custom_call.1
= control target key start
LH: loop header
LB: loop body
LE: loop exit
PB: predicated region body
PF: predicated region fallthrough
CT: control target
= control target key end

     0   :  { %s124_s0 = inlined_call_operand.<no memory space> [shape: f32[1], index: 0, kind: input, shape index: {}]   ;;  %s125_s1 = inlined_call_operand.vmem [shape: f32[2,128], index: 1, kind: input, shape index: {}]   ;;  %s126_s2 = inlined_call_operand.hbm [shape: f32[2,128], index: 2, kind: output, shape index: {}]  }
   0x1   :  { %v36_v0 = vld [vmem:[%s125_s1] sm:$0x3]  ;;  %v37_v1 = vstv %s124_s0 }
   0x2   :  { %8 = vsyncpa [#allocation4], 0  ;;  %v89_v2 = vmov 0.0   ;;  %vm38_vm0 = vcmp.lt.f32.partialorder %v36_v0, %v37_v1  ;;  %s90_s13 = smov [#allocation3]  }
   0x3   :  { %34 = vst [vmem:[#allocation3] sm:$0x3] %v89_v2  ;;  %v39_v3 = vsel %vm38_vm0, %v36_v0, 0.0  ;;  %s49_s14 = sshll.u32 %s90_s13, 4  ;;  %s50_s14 = int_to_ptr.vmem [resolvable:$true] %s49_s14 }
   0x4   :  { %s65_s15 = scalar_lea.vmem %s50_s14, 32  ;;  %p70_p1 = scmp.lt.s32.totalorder %s50_s14, %s50_s14 }
   0x5   :  { %p66_p0 = scmp.ne.s32.totalorder %s50_s14, %s65_s15  ;;  %p71_p2 = scmp.lt.s32.totalorder %s65_s15, %s65_s15 }
   0x7   :  { %p72_p3 = por %p71_p2, %p70_p1 }
   0x9   :  { %p73_p4 = pnand %p72_p3, %p66_p0 }
   0xa   :  { %v40_v4 = vld [vmem:[#allocation3] sm:$0x3] }
   0xb   :  { %v41_v5 = vadd.f32 %v40_v4, %v39_v3 }
   0xd   :  { %42 = vst [vmem:[#allocation3] sm:$0x3] %v41_v5 }
   0xe   :  { %76 = shalt.err (!%p73_p4)
}
   0xf   :  { %s77_s16 = scalar_lea.hbm %s126_s2, 32 }
  0x10   :  { %p78_p5 = scmp.ne.s32.totalorder %s126_s2, %s77_s16  ;;  %p81_p6 = scmp.lt.u32.totalorder %s77_s16, %s126_s2 }
  0x12   :  { %p83_p7 = pnand %p81_p6, %p78_p5 }
  0x14   :  { %86 = shalt.err (!%p83_p7)
}
  0x15   :  { %52 = dma.vmem_to_hbm [thread:$0]  %s50_s14, 32, %s126_s2, [#allocation4]  }
  0x16   :  { %87 = dma.done.wait [#allocation4], 32  }
  0x17   :  { %88 = vsyncadd [#allocation4], 4294967264 }
  0x18   :  { %56 = vsyncpa [#allocation4], 1 }

</bundles_post_ra>
